<compile_context>
chip_gen: v6e
topology: v6e:2x2x1
jax: 0.10.0
libtpu: 0.0.40
codegen_flags: <defaults>
</compile_context>

<pallas_src>
import jax
import jax.numpy as jnp
from jax.experimental import pallas as pl
from jax.experimental.pallas import tpu as pltpu

Z_LENGTH = 10
HIDDEN = 64
IN_FEATURES = 2
_CHUNK = 512          # internal lane-chunk; keeps live intermediates <~48 vregs


def _round_up(x, m):
    return ((x + m - 1) // m) * m


def _select_tiling(batch, bt_max):
    """Pick (batch_tile, padded_batch, n_tiles).

    - lane tiles are multiples of 128; multiples of _CHUNK once they exceed it
    - big tiles amortize per-grid-step overhead
    - keep >= 2 grid steps when possible so the "parallel" axis feeds both
      TensorCores on v7x (no-op on v5e/v6e)
    """
    padded_min = _round_up(batch, 128)
    gran = _CHUNK if padded_min > _CHUNK else 128
    bt_max = max(gran, _round_up(min(bt_max, padded_min), gran))
    n_tiles = pl.cdiv(padded_min, bt_max)
    if n_tiles == 1 and padded_min >= 2 * gran:
        n_tiles = 2
    bt = _round_up(pl.cdiv(padded_min, n_tiles), gran)
    padded = bt * n_tiles
    return bt, padded, n_tiles


def mlp_kernel(x_ref, w1_ref, b1_ref, w2_ref, b2_ref, w3_ref, b3_ref, o_ref):
    # x_ref: (2, BT)  -- batch on the lane axis
    # w*:    torch layout (out_features, in_features); b*: (out_features, 1)
    bt = x_ref.shape[-1]
    chunk = min(bt, _CHUNK)
    n_chunks = bt // chunk

    # Hoist weight/bias loads (and layer-1 column views) once per grid step.
    w1 = w1_ref[...]                       # (64, 2)   f32 (VPU path)
    w1c0, w1c1 = w1[:, 0:1], w1[:, 1:2]
    b1 = b1_ref[...]                       # (64, 1)   f32
    w2 = w2_ref[...]                       # (64, 64)  bf16 (MXU operand)
    b2 = b2_ref[...]                       # (64, 1)   f32
    w3 = w3_ref[...]                       # (10, 64)  bf16 (MXU operand)
    b3 = b3_ref[...]                       # (10, 1)   f32

    # Static Python loop -> static lane slices (zero-cost ref views).  Keeps
    # per-chunk (64, chunk) intermediates out of VMEM spills while the grid
    # step itself stays large enough to amortize the per-step overhead.
    for c in range(n_chunks):
        sl = pl.ds(c * chunk, chunk)
        xT = x_ref[:, sl]                                   # (2, chunk) f32

        # Layer 1 (K=2): two VPU broadcast MACs instead of an MXU matmul.
        h1 = jnp.tanh(w1c0 * xT[0:1, :] + w1c1 * xT[1:2, :] + b1)   # (64, chunk)

        # Layer 2: bf16 MXU operands, f32 accumulation, f32 bias add.
        h2 = jnp.dot(w2, h1.astype(w2.dtype),
                     preferred_element_type=jnp.float32) + b2       # (64, chunk)
        h2 = jnp.tanh(h2)

        # Layer 3: (10,64) @ (64,chunk); output tile is lane-dense.
        out = jnp.dot(w3, h2.astype(w3.dtype),
                      preferred_element_type=jnp.float32) + b3      # (10, chunk)
        o_ref[:, sl] = out.astype(o_ref.dtype)


def mlp_forward(x, params, *, bt=4096, mxu_dtype=jnp.bfloat16,
                transposed_output=False):
    """x: (batch, 2) f32 -> (batch, 10) f32  (or (10, batch) if
    transposed_output=True, avoiding the wrapper-side output transpose)."""
    w1, b1, w2, b2, w3, b3 = params
    batch = x.shape[0]

    bt, padded, n_tiles = _select_tiling(batch, bt)

    # Batch on the lane (last) axis; only pad the tail when necessary so we
    # don't add a full extra HBM pass for already-aligned batches.
    xT = x.T
    if padded != batch:
        xT = jnp.pad(xT, ((0, 0), (0, padded - batch)))

    # MXU weights in bf16 (f32 accumulation inside the kernel); layer-1 weight
    # and all biases stay f32.
    w2k = w2.astype(mxu_dtype)
    w3k = w3.astype(mxu_dtype)

    const = lambda a: pl.BlockSpec(a.shape, lambda i: (0, 0))

    param_args = (w1, b1, w2k, b2, w3k, b3)
    param_bytes = sum(int(a.size) * a.dtype.itemsize for a in param_args)
    cost = pl.CostEstimate(
        flops=2 * (IN_FEATURES * HIDDEN + HIDDEN * HIDDEN + HIDDEN * Z_LENGTH)
              * padded,
        transcendentals=2 * HIDDEN * padded,
        bytes_accessed=(IN_FEATURES + Z_LENGTH) * padded * 4 + param_bytes,
    )

    out_T = pl.pallas_call(
        mlp_kernel,
        out_shape=jax.ShapeDtypeStruct((Z_LENGTH, padded), jnp.float32),
        grid=(n_tiles,),
        in_specs=[
            pl.BlockSpec((IN_FEATURES, bt), lambda i: (0, i)),   # x tile
            const(w1), const(b1),
            const(w2k), const(b2),
            const(w3k), const(b3),
        ],
        out_specs=pl.BlockSpec((Z_LENGTH, bt), lambda i: (0, i)),
        compiler_params=pltpu.CompilerParams(
            dimension_semantics=("parallel",)),
        cost_estimate=cost,
    )(xT, w1, b1, w2k, b2, w3k, b3)

    out_T = out_T[:, :batch]
    return out_T if transposed_output else out_T.T


def init_params(key):
    """Deterministic init mimicking torch.nn.Linear defaults:
    U(-1/sqrt(fan_in), 1/sqrt(fan_in)); weights stored (out, in) like torch,
    biases stored as (out, 1) columns so they broadcast across the lane
    (batch) axis inside the kernel."""
    def linear(key, fan_in, fan_out):
        kw, kb = jax.random.split(key)
        bound = 1.0 / jnp.sqrt(fan_in)
        w = jax.random.uniform(kw, (fan_out, fan_in), jnp.float32, -bound, bound)
        b = jax.random.uniform(kb, (fan_out, 1), jnp.float32, -bound, bound)
        return w, b

    k1, k2, k3 = jax.random.split(key, 3)
    w1, b1 = linear(k1, IN_FEATURES, HIDDEN)
    w2, b2 = linear(k2, HIDDEN, HIDDEN)
    w3, b3 = linear(k3, HIDDEN, Z_LENGTH)
    return (w1, b1, w2, b2, w3, b3)


def _reference(x, params):
    w1, b1, w2, b2, w3, b3 = params
    h = jnp.tanh(x @ w1.T + b1.T)
    h = jnp.tanh(h @ w2.T + b2.T)
    return h @ w3.T + b3.T


if __name__ == "__main__":
    key = jax.random.PRNGKey(0)
    k_params, k_x1, k_x2 = jax.random.split(key, 3)
    params = init_params(k_params)

    # Small batch, f32 MXU path: tight numerical check (single 128-lane tile).
    batch = 8
    x = jax.random.normal(k_x1, (batch, IN_FEATURES), jnp.float32)
    out = jax.block_until_ready(mlp_forward(x, params, mxu_dtype=jnp.float32))
    ref = _reference(x, params)
    assert out.shape == (batch, Z_LENGTH)
    assert jnp.allclose(out, ref, atol=1e-5, rtol=1e-5)

    # Larger non-multiple batch, default bf16 MXU path: exercises the
    # multi-tile grid (2 tiles), tail padding, and internal chunking; looser
    # tolerance because matmul operands are bf16 (accumulation stays f32).
    batch2 = 300
    x2 = jax.random.normal(k_x2, (batch2, IN_FEATURES), jnp.float32)
    out2 = jax.block_until_ready(mlp_forward(x2, params))
    ref2 = _reference(x2, params)
    assert out2.shape == (batch2, Z_LENGTH)
    assert jnp.allclose(out2, ref2, atol=3e-2, rtol=3e-2)

    print("KERNEL_OK")
</pallas_src>

<mosaic_0001>
module attributes {stable_mosaic.version = 11 : i64} {
  func.func @mlp_kernel(%arg0: i32, %arg1: memref<2x128xf32, #tpu.memory_space<vmem>>, %arg2: memref<64x2xf32, #tpu.memory_space<vmem>>, %arg3: memref<64x1xf32, #tpu.memory_space<vmem>>, %arg4: memref<64x64xf32, #tpu.memory_space<vmem>>, %arg5: memref<64x1xf32, #tpu.memory_space<vmem>>, %arg6: memref<10x64xf32, #tpu.memory_space<vmem>>, %arg7: memref<10x1xf32, #tpu.memory_space<vmem>>, %arg8: memref<10x128xf32, #tpu.memory_space<vmem>>) attributes {dimension_semantics = [#tpu.dimension_semantics<parallel>], iteration_bounds = array<i64: 1>, scalar_prefetch = 0 : i64, scratch_operands = 0 : i64, tpu.core_type = #tpu.core_type<tc>, window_params = [{transform_indices = @transform_0, window_bounds = array<i64: 2, 128>}, {pipeline_mode = #tpu.pipeline_mode<synchronous>, transform_indices = @transform_1, window_bounds = array<i64: 64, 2>}, {pipeline_mode = #tpu.pipeline_mode<synchronous>, transform_indices = @transform_2, window_bounds = array<i64: 64, 1>}, {pipeline_mode = #tpu.pipeline_mode<synchronous>, transform_indices = @transform_3, window_bounds = array<i64: 64, 64>}, {pipeline_mode = #tpu.pipeline_mode<synchronous>, transform_indices = @transform_4, window_bounds = array<i64: 64, 1>}, {pipeline_mode = #tpu.pipeline_mode<synchronous>, transform_indices = @transform_5, window_bounds = array<i64: 10, 64>}, {pipeline_mode = #tpu.pipeline_mode<synchronous>, transform_indices = @transform_6, window_bounds = array<i64: 10, 1>}, {transform_indices = @transform_7, window_bounds = array<i64: 10, 128>}]} {
    %c0 = arith.constant 0 : index
    %c0_0 = arith.constant 0 : index
    %0 = vector.load %arg2[%c0, %c0_0] : memref<64x2xf32, #tpu.memory_space<vmem>>, vector<64x2xf32>
    %1 = vector.extract_strided_slice %0 {offsets = [0, 0], sizes = [64, 1], strides = [1, 1]} : vector<64x2xf32> to vector<64x1xf32>
    %2 = vector.extract_strided_slice %0 {offsets = [0, 1], sizes = [64, 1], strides = [1, 1]} : vector<64x2xf32> to vector<64x1xf32>
    %c0_1 = arith.constant 0 : index
    %c0_2 = arith.constant 0 : index
    %3 = vector.load %arg3[%c0_1, %c0_2] : memref<64x1xf32, #tpu.memory_space<vmem>>, vector<64x1xf32>
    %c0_3 = arith.constant 0 : index
    %c0_4 = arith.constant 0 : index
    %4 = vector.load %arg4[%c0_3, %c0_4] : memref<64x64xf32, #tpu.memory_space<vmem>>, vector<64x64xf32>
    %c0_5 = arith.constant 0 : index
    %c0_6 = arith.constant 0 : index
    %5 = vector.load %arg5[%c0_5, %c0_6] : memref<64x1xf32, #tpu.memory_space<vmem>>, vector<64x1xf32>
    %c0_7 = arith.constant 0 : index
    %c0_8 = arith.constant 0 : index
    %6 = vector.load %arg6[%c0_7, %c0_8] : memref<10x64xf32, #tpu.memory_space<vmem>>, vector<10x64xf32>
    %c0_9 = arith.constant 0 : index
    %c0_10 = arith.constant 0 : index
    %7 = vector.load %arg7[%c0_9, %c0_10] : memref<10x1xf32, #tpu.memory_space<vmem>>, vector<10x1xf32>
    %c0_11 = arith.constant 0 : index
    %c0_12 = arith.constant 0 : index
    %8 = vector.load %arg1[%c0_11, %c0_12] : memref<2x128xf32, #tpu.memory_space<vmem>>, vector<2x128xf32>
    %9 = vector.extract_strided_slice %8 {offsets = [0, 0], sizes = [1, 128], strides = [1, 1]} : vector<2x128xf32> to vector<1x128xf32>
    %10 = vector.broadcast %1 : vector<64x1xf32> to vector<64x128xf32>
    %11 = vector.broadcast %9 : vector<1x128xf32> to vector<64x128xf32>
    %12 = arith.mulf %10, %11 : vector<64x128xf32>
    %13 = vector.extract_strided_slice %8 {offsets = [1, 0], sizes = [1, 128], strides = [1, 1]} : vector<2x128xf32> to vector<1x128xf32>
    %14 = vector.broadcast %2 : vector<64x1xf32> to vector<64x128xf32>
    %15 = vector.broadcast %13 : vector<1x128xf32> to vector<64x128xf32>
    %16 = arith.mulf %14, %15 : vector<64x128xf32>
    %17 = arith.addf %12, %16 : vector<64x128xf32>
    %18 = vector.broadcast %3 : vector<64x1xf32> to vector<64x128xf32>
    %19 = arith.addf %17, %18 : vector<64x128xf32>
    %20 = math.tanh %19 : vector<64x128xf32>
    %cst = arith.constant dense<0.000000e+00> : vector<64x128xf32>
    %21 = tpu.matmul %4, %20, %cst {dimension_numbers = #tpu.dot_dimension_numbers<[1], [0], [0], [1], [0, 0, 1, 1], [], []>} : vector<64x64xf32>, vector<64x128xf32>, vector<64x128xf32> -> vector<64x128xf32>
    %22 = vector.broadcast %5 : vector<64x1xf32> to vector<64x128xf32>
    %23 = arith.addf %21, %22 : vector<64x128xf32>
    %24 = math.tanh %23 : vector<64x128xf32>
    %cst_13 = arith.constant dense<0.000000e+00> : vector<10x128xf32>
    %25 = tpu.matmul %6, %24, %cst_13 {dimension_numbers = #tpu.dot_dimension_numbers<[1], [0], [0], [1], [0, 0, 1, 1], [], []>} : vector<10x64xf32>, vector<64x128xf32>, vector<10x128xf32> -> vector<10x128xf32>
    %26 = vector.broadcast %7 : vector<10x1xf32> to vector<10x128xf32>
    %27 = arith.addf %25, %26 : vector<10x128xf32>
    %c0_14 = arith.constant 0 : index
    %c0_15 = arith.constant 0 : index
    %28 = vector.load %arg8[%c0_14, %c0_15] : memref<10x128xf32, #tpu.memory_space<vmem>>, vector<10x128xf32>
    tpu.vector_store %arg8[%c0_14, %c0_15], %27 {strides = array<i32>} : memref<10x128xf32, #tpu.memory_space<vmem>>, vector<10x128xf32>,
    return
  }
  func.func @transform_0(%arg0: i32) -> (i32, i32) {
    %c0_i32 = arith.constant 0 : i32
    %c0_i32_0 = arith.constant 0 : i32
    return %c0_i32, %arg0 : i32, i32
  }
  func.func @transform_1(%arg0: i32) -> (i32, i32) {
    %c0_i32 = arith.constant 0 : i32
    %c0_i32_0 = arith.constant 0 : i32
    %c0_i32_1 = arith.constant 0 : i32
    return %c0_i32, %c0_i32_0 : i32, i32
  }
  func.func @transform_2(%arg0: i32) -> (i32, i32) {
    %c0_i32 = arith.constant 0 : i32
    %c0_i32_0 = arith.constant 0 : i32
    %c0_i32_1 = arith.constant 0 : i32
    return %c0_i32, %c0_i32_0 : i32, i32
  }
  func.func @transform_3(%arg0: i32) -> (i32, i32) {
    %c0_i32 = arith.constant 0 : i32
    %c0_i32_0 = arith.constant 0 : i32
    %c0_i32_1 = arith.constant 0 : i32
    return %c0_i32, %c0_i32_0 : i32, i32
  }
  func.func @transform_4(%arg0: i32) -> (i32, i32) {
    %c0_i32 = arith.constant 0 : i32
    %c0_i32_0 = arith.constant 0 : i32
    %c0_i32_1 = arith.constant 0 : i32
    return %c0_i32, %c0_i32_0 : i32, i32
  }
  func.func @transform_5(%arg0: i32) -> (i32, i32) {
    %c0_i32 = arith.constant 0 : i32
    %c0_i32_0 = arith.constant 0 : i32
    %c0_i32_1 = arith.constant 0 : i32
    return %c0_i32, %c0_i32_0 : i32, i32
  }
  func.func @transform_6(%arg0: i32) -> (i32, i32) {
    %c0_i32 = arith.constant 0 : i32
    %c0_i32_0 = arith.constant 0 : i32
    %c0_i32_1 = arith.constant 0 : i32
    return %c0_i32, %c0_i32_0 : i32, i32
  }
  func.func @transform_7(%arg0: i32) -> (i32, i32) {
    %c0_i32 = arith.constant 0 : i32
    %c0_i32_0 = arith.constant 0 : i32
    return %c0_i32, %arg0 : i32, i32
  }
}

</mosaic_0001>

<bundles_post_ra>
// kernel: tpu_custom_call.1
= control target key start
LH: loop header
LB: loop body
LE: loop exit
PB: predicated region body
PF: predicated region fallthrough
CT: control target
= control target key end

     0   :  { %v664_v2 = vmov 1   ;;  %v665_v3 = vmov 0   ;;  %s833_s0 = inlined_call_operand.vmem [shape: f32[2,128], index: 0, kind: input, shape index: {}]   ;;  %s834_s1 = inlined_call_operand.vmem [shape: f32[64,2], index: 1, kind: input, shape index: {}]   ;;  %s835_s2 = inlined_call_operand.vmem [shape: f32[64,1], index: 2, kind: input, shape index: {}]   ;;  %s836_s3 = inlined_call_operand.vmem [shape: f32[64,64], index: 3, kind: input, shape index: {}]   ;;  %s837_s4 = inlined_call_operand.vmem [shape: f32[64,1], index: 4, kind: input, shape index: {}]   ;;  %s838_s5 = inlined_call_operand.vmem [shape: f32[10,64], index: 5, kind: input, shape index: {}]   ;;  %s839_s6 = inlined_call_operand.vmem [shape: f32[10,1], index: 6, kind: input, shape index: {}]   ;;  %s840_s7 = inlined_call_operand.hbm [shape: f32[10,128], index: 7, kind: output, shape index: {}]  }
   0x1   :  { %v34_v0 = vld [vmem:[%s834_s1 + $0x38] sm:$0xff]  ;;  %v33_v1 = vld [vmem:[%s834_s1 + $0x30] sm:$0xff]  ;;  %599 = vset.pattern.permute.xlu0 %v664_v2  ;;  %600 = vset.pattern.permute.xlu1 %v665_v3  ;;  %v32_v4 = vld [vmem:[%s834_s1 + $0x28] sm:$0xff] }
   0x2   :  { %145 = vperm.xlu0 %599, %v34_v0   ;;  %96 = vperm.xlu1 %600, %v33_v1   ;;  %v29_v5 = vld [vmem:[%s834_s1 + $0x10] sm:$0xff] }
   0x6   :  { %601 = vset.pattern.permute.xlu1 %v664_v2  ;;  %137 = vperm.xlu0 %599, %v32_v4  }
   0x7   :  { %141 = vperm.xlu1 %601, %v33_v1  }
   0x8   :  { %12 = vsyncpa [#allocation3], 0  ;;  %v28_v6 = vld [vmem:[%s834_s1 + $0x8] sm:$0xff]  ;;  %v42_v7 = vld [vmem:[%s835_s2 + $0x38] sm:$0xff]  ;;  %vm264_vm0 = vcmask 523264   ;;  %v104_v31 = vlaneseq  ;;  %s666_s22 = smov [#allocation2]  }
   0x9   :  { %v31_v8 = vld [vmem:[%s834_s1 + $0x20] sm:$0xff]  ;;  %v41_v9 = vld [vmem:[%s835_s2 + $0x30] sm:$0xff]  ;;  %v30_v10 = vld [vmem:[%s834_s1 + $0x18] sm:$0xff]  ;;  %s500_s23 = sshll.u32 %s666_s22, 4  ;;  %s501_s23 = int_to_ptr.vmem [resolvable:$true] %s500_s23 }
   0xa   :  { %125 = vperm.xlu0 %599, %v29_v5   ;;  %v40_v11 = vld [vmem:[%s835_s2 + $0x28] sm:$0xff]  ;;  %v27_v12 = vld [vmem:[%s834_s1] sm:$0xff]  ;;  %v58_v15 = vld [vmem:[%s837_s4 + $0x38] sm:$0xff]  ;;  %v105_v34 = vshrl.u32 %v104_v31, 7  ;;  %s642_s24 = scalar_lea.vmem %s501_s23, 256  ;;  %p647_p1 = scmp.lt.s32.totalorder %s501_s23, %s501_s23 }
   0xb   :  { %602 = vset.pattern.permute.xlu1 %v665_v3  ;;  %v36_v13 = vld [vmem:[%s835_s2 + $0x8] sm:$0xff]  ;;  %v39_v14 = vld [vmem:[%s835_s2 + $0x20] sm:$0xff]  ;;  %v38_v17 = vld [vmem:[%s835_s2 + $0x18] sm:$0xff]  ;;  %p643_p0 = scmp.ne.s32.totalorder %s501_s23, %s642_s24  ;;  %p648_p2 = scmp.lt.s32.totalorder %s642_s24, %s642_s24 }
   0xc   :  { %91 = vperm.xlu1 %602, %v32_v4   ;;  %v56_v16 = vld [vmem:[%s837_s4 + $0x28] sm:$0xff]  ;;  %v54_v18 = vld [vmem:[%s837_s4 + $0x18] sm:$0xff]  ;;  %v37_v20 = vld [vmem:[%s835_s2 + $0x10] sm:$0xff]  ;;  %v150_v36 = vsub.s32 1, %v105_v34  ;;  %v106_v38 = vsub.s32 0, %v105_v34 }
   0xd   :  { %v52_v19 = vld [vmem:[%s837_s4 + $0x8] sm:$0xff]  ;;  %v61_v21 = vld [vmem:[%s839_s6] sm:$0xff]  ;;  %v57_v23 = vld [vmem:[%s837_s4 + $0x30] sm:$0xff]  ;;  %p649_p3 = por %p648_p2, %p647_p1 }
   0xe   :  { %121 = vperm.xlu0 %599, %v28_v6   ;;  %v35_v22 = vld [vmem:[%s835_s2] sm:$0xff]  ;;  %v53_v25 = vld [vmem:[%s837_s4 + $0x10] sm:$0xff]  ;;  %v62_v28 = vld [vmem:[%s839_s6 + $0x8] sm:$0x3] }
   0xf   :  { %v55_v24 = vld [vmem:[%s837_s4 + $0x20] sm:$0xff]  ;;  %p650_p4 = pnand %p649_p3, %p643_p0 }
  0x10   :  { %205 = vperm.xlu1 %602, %v42_v7   ;;  %v51_v26 = vld [vmem:[%s837_s4] sm:$0xff] }
  0x11   :  { %v43_v27 = vld [vmem:[%s836_s3] sm:$0xff] }
  0x12   :  { %607 = vset.pattern.permute.xlu0 %v665_v3  ;;  %563 = vmatprep.mubr.msk.f32.mxu0 %vm264_vm0, %v43_v27  ;;  %v63_v40 = vld [vmem:[%s833_s0] sm:$0x3] }
  0x13   :  { %101 = vperm.xlu0 %607, %v34_v0   ;;  %v151_v41 = vrot.slane %v63_v40, %v150_v36  ;;  %v107_v43 = vrot.slane %v63_v40, %v106_v38  ;;  %v44_v36 = vld [vmem:[%s836_s3 + $0x8] sm:$0xff]  ;;  %v46_v38 = vld [vmem:[%s836_s3 + $0x18] sm:$0xff] }
  0x14   :  { %603 = vset.pattern.permute.xlu1 %v664_v2  ;;  %v48_v40 = vld [vmem:[%s836_s3 + $0x28] sm:$0xff] }
  0x15   :  { %133 = vperm.xlu1 %603, %v31_v8  }
  0x17   :  { %86 = vperm.xlu0 %607, %v31_v8  }
  0x19   :  { %604 = vset.pattern.permute.xlu1 %v665_v3 }
  0x1a   :  { %200 = vperm.xlu1 %604, %v41_v9  }
  0x1b   :  { %81 = vperm.xlu0 %607, %v30_v10  }
  0x1e   :  { %605 = vset.pattern.permute.xlu1 %v664_v2 }
  0x1f   :  { %129 = vperm.xlu1 %605, %v30_v10   ;;  %195 = vperm.xlu0 %607, %v40_v11  }
  0x23   :  { %606 = vset.pattern.permute.xlu1 %v665_v3  ;;  %66 = vperm.xlu0 %607, %v27_v12  }
  0x24   :  { %76 = vperm.xlu1 %606, %v29_v5  }
  0x27   :  { %175 = vperm.xlu0 %607, %v36_v13  }
  0x28   :  { %190 = vperm.xlu1 %606, %v39_v14  }
  0x2b   :  { %261 = vperm.xlu0 %607, %v58_v15  }
  0x2c   :  { %71 = vperm.xlu1 %606, %v28_v6  }
  0x2f   :  { %251 = vperm.xlu0 %607, %v56_v16  }
  0x30   :  { %185 = vperm.xlu1 %606, %v38_v17  }
  0x33   :  { %241 = vperm.xlu0 %607, %v54_v18  }
  0x34   :  { %608 = vset.pattern.permute.xlu1 %v664_v2 }
  0x35   :  { %117 = vperm.xlu1 %608, %v27_v12  }
  0x37   :  { %231 = vperm.xlu0 %607, %v52_v19  }
  0x39   :  { %609 = vset.pattern.permute.xlu1 %v665_v3 }
  0x3a   :  { %180 = vperm.xlu1 %609, %v37_v20  }
  0x3b   :  { %404 = vperm.xlu0 %607, %v61_v21  }
  0x3e   :  { %170 = vperm.xlu1 %609, %v35_v22  }
  0x42   :  { %256 = vperm.xlu1 %609, %v57_v23  }
  0x46   :  { %246 = vperm.xlu1 %609, %v55_v24  }
  0x4a   :  { %236 = vperm.xlu1 %609, %v53_v25  }
  0x4e   :  { %226 = vperm.xlu1 %609, %v51_v26  }
  0x52   :  { %409 = vperm.xlu1 %609, %v62_v28  }
  0x7d   :  { %v97_v29 = vpop.permute.xlu1 %96  ;;  %v146_v30 = vpop.permute.xlu0 %145 }
  0x7e   :  { %v159_v44 = vmul.f32 %v151_v41, %v146_v30  ;;  %v114_v50 = vmul.f32 %v107_v43, %v97_v29 }
  0x81   :  { %v138_v32 = vpop.permute.xlu0 %137 }
  0x82   :  { %v142_v33 = vpop.permute.xlu1 %141  ;;  %v157_v54 = vmul.f32 %v151_v41, %v138_v32 }
  0x83   :  { %v158_v47 = vmul.f32 %v151_v41, %v142_v33 }
  0x85   :  { %v126_v35 = vpop.permute.xlu0 %125  ;;  %v166_v53 = vadd.f32 %v158_v47, %v114_v50 }
  0x86   :  { %v154_v19 = vmul.f32 %v151_v41, %v126_v35 }
  0x87   :  { %v92_v37 = vpop.permute.xlu1 %91 }
  0x88   :  { %v113_v55 = vmul.f32 %v107_v43, %v92_v37  ;;  %v45_v37 = vld [vmem:[%s836_s3 + $0x10] sm:$0xff] }
  0x89   :  { %v122_v39 = vpop.permute.xlu0 %121 }
  0x8a   :  { %v165_v59 = vadd.f32 %v157_v54, %v113_v55  ;;  %v153_v16 = vmul.f32 %v151_v41, %v122_v39  ;;  %v47_v39 = vld [vmem:[%s836_s3 + $0x20] sm:$0xff] }
  0x8b   :  { %v206_v42 = vpop.permute.xlu1 %205 }
  0x8e   :  { %v102_v45 = vpop.permute.xlu0 %101 }
  0x8f   :  { %v115_v46 = vmul.f32 %v107_v43, %v102_v45 }
  0x90   :  { %v134_v48 = vpop.permute.xlu1 %133 }
  0x91   :  { %v167_v49 = vadd.f32 %v159_v44, %v115_v46  ;;  %v156_v1 = vmul.f32 %v151_v41, %v134_v48 }
  0x92   :  { %v87_v51 = vpop.permute.xlu0 %86 }
  0x93   :  { %v215_v52 = vadd.f32 %v206_v42, %v167_v49  ;;  %v112_v63 = vmul.f32 %v107_v43, %v87_v51  ;;  %v50_v42 = vld [vmem:[%s836_s3 + $0x38] sm:$0xff] }
  0x95   :  { %610 = vtanh.f32 %v215_v52  ;;  %v201_v56 = vpop.permute.xlu1 %200  ;;  %v164_v3 = vadd.f32 %v156_v1, %v112_v63 }
  0x96   :  { %v214_v57 = vadd.f32 %v201_v56, %v166_v53  ;;  %v82_v58 = vpop.permute.xlu0 %81 }
  0x97   :  { %v111_v7 = vmul.f32 %v107_v43, %v82_v58 }
  0x98   :  { %612 = vtanh.f32 %v214_v57 }
  0x9a   :  { %v130_v60 = vpop.permute.xlu1 %129  ;;  %v196_v61 = vpop.permute.xlu0 %195 }
  0x9b   :  { %v213_v62 = vadd.f32 %v196_v61, %v165_v59  ;;  %v155_v8 = vmul.f32 %v151_v41, %v130_v60 }
  0x9d   :  { %614 = vtanh.f32 %v213_v62  ;;  %v163_v11 = vadd.f32 %v155_v8, %v111_v7 }
  0x9e   :  { %v67_v15 = vpop.permute.xlu0 %66 }
  0x9f   :  { %v77_v0 = vpop.permute.xlu1 %76  ;;  %v108_v26 = vmul.f32 %v107_v43, %v67_v15 }
  0xa0   :  { %v110_v17 = vmul.f32 %v107_v43, %v77_v0 }
  0xa2   :  { %v611_v2 = vpop.eup %610  ;;  %v162_v23 = vadd.f32 %v154_v19, %v110_v17  ;;  %v176_v24 = vpop.permute.xlu0 %175 }
  0xa3   :  { %v191_v4 = vpop.permute.xlu1 %190  ;;  %547 = vmatprep.subr.mxu0 %v611_v2 }
  0xa4   :  { %v212_v5 = vadd.f32 %v191_v4, %v164_v3  ;;  %548 = vmatpush3.msra.mxu0 %v611_v2 }
  0xa5   :  { %v613_v6 = vpop.eup %612 }
  0xa6   :  { %616 = vtanh.f32 %v212_v5  ;;  %549 = vmatprep.subr.mxu0 %v613_v6  ;;  %v262_v46 = vpop.permute.xlu0 %261 }
  0xa7   :  { %550 = vmatpush3.msra.mxu0 %v613_v6  ;;  %v72_v9 = vpop.permute.xlu1 %71 }
  0xa8   :  { %v109_v14 = vmul.f32 %v107_v43, %v72_v9  ;;  %v59_v43 = vld [vmem:[%s838_s5] sm:$0xff] }
  0xa9   :  { %591 = vmatprep.mubr.msk.f32.mxu1 %vm264_vm0, %v59_v43 }
  0xaa   :  { %v615_v10 = vpop.eup %614  ;;  %v161_v20 = vadd.f32 %v153_v16, %v109_v14  ;;  %v252_v51 = vpop.permute.xlu0 %251 }
  0xab   :  { %551 = vmatprep.subr.mxu0 %v615_v10  ;;  %v186_v12 = vpop.permute.xlu1 %185 }
  0xac   :  { %v211_v13 = vadd.f32 %v186_v12, %v163_v11  ;;  %552 = vmatpush3.msra.mxu0 %v615_v10  ;;  %v209_v27 = vadd.f32 %v176_v24, %v161_v20  ;;  %v60_v12 = vld [vmem:[%s838_s5 + $0x8] sm:$0x3] }
  0xae   :  { %618 = vtanh.f32 %v211_v13  ;;  %v242_v59 = vpop.permute.xlu0 %241 }
  0xb0   :  { %v118_v18 = vpop.permute.xlu1 %117 }
  0xb1   :  { %v152_v22 = vmul.f32 %v151_v41, %v118_v18  ;;  %v49_v41 = vld [vmem:[%s836_s3 + $0x30] sm:$0xff] }
  0xb2   :  { %v232_v0 = vpop.permute.xlu0 %231 }
  0xb3   :  { %v617_v21 = vpop.eup %616  ;;  %v160_v29 = vadd.f32 %v152_v22, %v108_v26 }
  0xb4   :  { %553 = vmatprep.subr.mxu0 %v617_v21 }
  0xb5   :  { %554 = vmatpush3.msra.mxu0 %v617_v21  ;;  %v181_v25 = vpop.permute.xlu1 %180 }
  0xb6   :  { %v210_v28 = vadd.f32 %v181_v25, %v162_v23  ;;  %v405_v16 = vpop.permute.xlu0 %404 }
  0xb8   :  { %620 = vtanh.f32 %v210_v28 }
  0xb9   :  { %v171_v30 = vpop.permute.xlu1 %170  ;;  %622 = vtanh.f32 %v209_v27 }
  0xba   :  { %v208_v31 = vadd.f32 %v171_v30, %v160_v29 }
  0xbb   :  { %v619_v32 = vpop.eup %618 }
  0xbc   :  { %624 = vtanh.f32 %v208_v31  ;;  %555 = vmatprep.subr.mxu0 %v619_v32 }
  0xbd   :  { %556 = vmatpush3.msra.mxu0 %v619_v32  ;;  %v257_v48 = vpop.permute.xlu1 %256 }
  0xc1   :  { %v247_v53 = vpop.permute.xlu1 %246 }
  0xc5   :  { %v621_v33 = vpop.eup %620  ;;  %v237_v61 = vpop.permute.xlu1 %236 }
  0xc6   :  { %557 = vmatprep.subr.mxu0 %v621_v33  ;;  %v623_v34 = vpop.eup %622 }
  0xc7   :  { %558 = vmatpush3.msra.mxu0 %v621_v33 }
  0xc8   :  { %559 = vmatprep.subr.mxu0 %v623_v34 }
  0xc9   :  { %v625_v35 = vpop.eup %624  ;;  %560 = vmatpush3.msra.mxu0 %v623_v34  ;;  %v227_v2 = vpop.permute.xlu1 %226 }
  0xca   :  { %561 = vmatprep.subr.mxu0 %v625_v35 }
  0xcb   :  { %562 = vmatpush3.msra.mxu0 %v625_v35 }
  0xcc   :  { %564 = vmatmul.mubr.msk.f32.vlgmr.msra.gmra.mxu0 %vm264_vm0, %v44_v36 }
  0xcd   :  { %566 = vmatprep.mubr.msk.f32.mxu0 %vm264_vm0, %v45_v37  ;;  %v410_v13 = vpop.permute.xlu1 %409 }
  0xd0   :  { %567 = vmatmul.mubr.msk.f32.gmra.mxu0 %vm264_vm0, %v46_v38 }
  0xd1   :  { %569 = vmatprep.mubr.msk.f32.mxu0 %vm264_vm0, %v47_v39 }
  0xd4   :  { %570 = vmatmul.mubr.msk.f32.gmra.mxu0 %vm264_vm0, %v48_v40 }
  0xd5   :  { %572 = vmatprep.mubr.msk.f32.mxu0 %vm264_vm0, %v49_v41 }
  0xd8   :  { %573 = vmatmul.mubr.msk.f32.gmra.mxu0 %vm264_vm0, %v50_v42 }
 0x18c   :  { %v565_v44 = vpop.f32.mrf.mxu0 }
 0x18d   :  { %v361_v1 = vadd.f32 %v565_v44, %v232_v0 }
 0x18e   :  { %v355_v45 = vpop.f32.mrf.mxu0 }
 0x18f   :  { %v356_v3 = vadd.f32 %v355_v45, %v227_v2 }
 0x190   :  { %v568_v47 = vpop.f32.mrf.mxu0 }
 0x191   :  { %v371_v62 = vadd.f32 %v568_v47, %v242_v59 }
 0x192   :  { %v365_v49 = vpop.f32.mrf.mxu0 }
 0x193   :  { %v366_v63 = vadd.f32 %v365_v49, %v237_v61 }
 0x194   :  { %v571_v50 = vpop.f32.mrf.mxu0 }
 0x195   :  { %v381_v57 = vadd.f32 %v571_v50, %v252_v51 }
 0x196   :  { %v375_v52 = vpop.f32.mrf.mxu0 }
 0x197   :  { %v376_v60 = vadd.f32 %v375_v52, %v247_v53 }
 0x198   :  { %v574_v54 = vpop.f32.mrf.mxu0 }
 0x199   :  { %v391_v55 = vadd.f32 %v574_v54, %v262_v46 }
 0x19a   :  { %v385_v56 = vpop.f32.mrf.mxu0 }
 0x19b   :  { %626 = vtanh.f32 %v391_v55  ;;  %v386_v58 = vadd.f32 %v385_v56, %v257_v48 }
 0x19d   :  { %628 = vtanh.f32 %v386_v58 }
 0x19e   :  { %630 = vtanh.f32 %v381_v57 }
 0x19f   :  { %632 = vtanh.f32 %v376_v60 }
 0x1a0   :  { %634 = vtanh.f32 %v371_v62 }
 0x1a1   :  { %636 = vtanh.f32 %v366_v63 }
 0x1a2   :  { %638 = vtanh.f32 %v361_v1 }
 0x1a3   :  { %640 = vtanh.f32 %v356_v3 }
 0x1a8   :  { %v627_v4 = vpop.eup %626 }
 0x1a9   :  { %575 = vmatprep.subr.mxu1 %v627_v4 }
 0x1aa   :  { %v629_v5 = vpop.eup %628  ;;  %576 = vmatpush3.msra.mxu1 %v627_v4 }
 0x1ab   :  { %577 = vmatprep.subr.mxu1 %v629_v5  ;;  %v631_v6 = vpop.eup %630 }
 0x1ac   :  { %578 = vmatpush3.msra.mxu1 %v629_v5  ;;  %v633_v7 = vpop.eup %632 }
 0x1ad   :  { %579 = vmatprep.subr.mxu1 %v631_v6  ;;  %v635_v8 = vpop.eup %634 }
 0x1ae   :  { %580 = vmatpush3.msra.mxu1 %v631_v6  ;;  %v637_v9 = vpop.eup %636 }
 0x1af   :  { %581 = vmatprep.subr.mxu1 %v633_v7  ;;  %v639_v10 = vpop.eup %638 }
 0x1b0   :  { %582 = vmatpush3.msra.mxu1 %v633_v7  ;;  %v641_v11 = vpop.eup %640 }
 0x1b1   :  { %583 = vmatprep.subr.mxu1 %v635_v8 }
 0x1b2   :  { %584 = vmatpush3.msra.mxu1 %v635_v8 }
 0x1b3   :  { %585 = vmatprep.subr.mxu1 %v637_v9 }
 0x1b4   :  { %586 = vmatpush3.msra.mxu1 %v637_v9 }
 0x1b5   :  { %587 = vmatprep.subr.mxu1 %v639_v10 }
 0x1b6   :  { %588 = vmatpush3.msra.mxu1 %v639_v10 }
 0x1b7   :  { %589 = vmatprep.subr.mxu1 %v641_v11 }
 0x1b8   :  { %590 = vmatpush3.msra.mxu1 %v641_v11 }
 0x1b9   :  { %592 = vmatmul.mubr.msk.f32.vlgmr.msra.gmra.mxu1 %vm264_vm0, %v60_v12 }
 0x279   :  { %v593_v14 = vpop.f32.mrf.mxu1 }
 0x27a   :  { %v490_v15 = vadd.f32 %v593_v14, %v410_v13 }
 0x27b   :  { %v484_v17 = vpop.f32.mrf.mxu1 }
 0x27c   :  { %494 = vst [vmem:[#allocation2 + $0x8] sm:$0x3] %v490_v15  ;;  %v485_v18 = vadd.f32 %v484_v17, %v405_v16 }
 0x27e   :  { %493 = vst [vmem:[#allocation2] sm:$0xff] %v485_v18 }
 0x27f   :  { %653 = shalt.err (!%p650_p4)
}
 0x280   :  { %s667_s5 = smov 128   ;;  %s668_s25 = smov 8  }
 0x281   :  { %506 = dma.vmem_to_hbm [thread:$0]  %s501_s23, 256, %s840_s7, [#allocation3], %s667_s5, %s667_s5, %s668_s25  }
 0x282   :  { %662 = dma.done.wait [#allocation3], 256  }
 0x283   :  { %663 = vsyncadd [#allocation3], 4294967040 }
 0x284   :  { %510 = vsyncpa [#allocation3], 1 }

</bundles_post_ra>
